<compile_context>
chip_gen: v5e
topology: v5e:2x2
jax: 0.10.0
libtpu: 0.0.40
codegen_flags: <defaults>
</compile_context>

<pallas_src>
import math

import jax
import jax.numpy as jnp
from jax.experimental import pallas as pl
from jax.experimental.pallas import tpu as pltpu

LANE = 128  # lane width: all last dims padded to a multiple of this


def _round_up(x, m):
    return ((x + m - 1) // m) * m


def _mlp_kernel(x_ref, w1_ref, b1_ref, w2_ref, b2_ref, w3_ref, b3_ref, o_ref):
    # Fused hot path on the current lane-dense row tile:
    # matmul -> +bias -> ReLU -> matmul -> +bias -> matmul -> +bias.
    # Dropout (eval mode) == identity.
    x = x_ref[...]
    h1 = jnp.dot(x, w1_ref[...], preferred_element_type=jnp.float32) + b1_ref[...]
    h1 = jnp.maximum(h1, 0.0)                               # ReLU
    h1 = h1.astype(w2_ref.dtype)
    h2 = jnp.dot(h1, w2_ref[...], preferred_element_type=jnp.float32) + b2_ref[...]
    h2 = h2.astype(w3_ref.dtype)
    out = jnp.dot(h2, w3_ref[...], preferred_element_type=jnp.float32) + b3_ref[...]
    o_ref[...] = out.astype(o_ref.dtype)


def mlp_forward(x, adj, params, *, tile_m=1024, compute_dtype=jnp.bfloat16):
    """Run the fused MLP kernel. `adj` is unused (kept for API parity with the module)."""
    del adj
    w1, b1, w2, b2, w3, b3 = params
    N, nfeat = x.shape
    nhid = w1.shape[1]
    nout = w3.shape[1]
    out_dtype = x.dtype

    cbytes = jnp.dtype(compute_dtype).itemsize
    obytes = jnp.dtype(out_dtype).itemsize
    sublane = 16 if cbytes == 2 else 8

    # Pad feature dims to lane width (128) so matmuls and output stores are lane-dense.
    nfeat_p = _round_up(nfeat, LANE)
    nhid_p = _round_up(nhid, LANE)
    nout_p = _round_up(nout, LANE)

    # Resident weight + bias footprint (copied into VMEM once, buffered x2 by the pipeline).
    weight_bytes = (nfeat_p * nhid_p + nhid_p * nhid_p + nhid_p * nout_p) * cbytes
    bias_bytes = (2 * nhid_p + nout_p) * 4

    # Row tile: as large as requested (collapses to one grid step for small N),
    # then shrink until double-buffered moving tiles + f32 intermediates + weights
    # fit a conservative 48 MiB VMEM budget (under v7x's 64 MiB physical).
    VMEM_BUDGET = 48 * 1024 * 1024
    tile_m = max(sublane, _round_up(min(tile_m, N), sublane))

    def footprint(tm):
        moving = tm * nfeat_p * cbytes + tm * nout_p * obytes        # x tile + out tile
        interm = 2 * tm * nhid_p * 4                                  # f32 h1/h2 live values
        return 2 * (weight_bytes + bias_bytes + moving) + interm

    while tile_m > sublane and footprint(tile_m) > VMEM_BUDGET:
        tile_m = max(sublane, _round_up(tile_m // 2, sublane))

    N_p = _round_up(N, tile_m)
    grid = (N_p // tile_m,)

    # Zero-pad inputs / weights. Zero weight columns produce zero (pre-bias)
    # activations in padded hidden lanes; padded biases are zero, and zero rows
    # in the next layer's weights kill those lanes again -> math unchanged.
    def pad2(a, r, c, dtype):
        return jnp.pad(a, ((0, r - a.shape[0]), (0, c - a.shape[1]))).astype(dtype)

    x_p = pad2(x, N_p, nfeat_p, compute_dtype)
    w1_p = pad2(w1, nfeat_p, nhid_p, compute_dtype)
    w2_p = pad2(w2, nhid_p, nhid_p, compute_dtype)
    w3_p = pad2(w3, nhid_p, nout_p, compute_dtype)
    b1_p = pad2(b1, 1, nhid_p, jnp.float32)
    b2_p = pad2(b2, 1, nhid_p, jnp.float32)
    b3_p = pad2(b3, 1, nout_p, jnp.float32)

    # Row tile of x / out moves with the grid; weights & biases are resident full blocks
    # (constant block index -> fetched once, not re-DMA'd per grid step).
    x_spec = pl.BlockSpec((tile_m, nfeat_p), lambda i: (i, 0))
    w1_spec = pl.BlockSpec((nfeat_p, nhid_p), lambda i: (0, 0))
    b1_spec = pl.BlockSpec((1, nhid_p), lambda i: (0, 0))
    w2_spec = pl.BlockSpec((nhid_p, nhid_p), lambda i: (0, 0))
    b2_spec = pl.BlockSpec((1, nhid_p), lambda i: (0, 0))
    w3_spec = pl.BlockSpec((nhid_p, nout_p), lambda i: (0, 0))
    b3_spec = pl.BlockSpec((1, nout_p), lambda i: (0, 0))
    o_spec = pl.BlockSpec((tile_m, nout_p), lambda i: (i, 0))

    vmem_limit = int(min(max(footprint(tile_m) + (8 << 20), 32 << 20), 48 << 20))

    flops = 2 * N_p * (nfeat_p * nhid_p + nhid_p * nhid_p + nhid_p * nout_p)
    bytes_accessed = int(x_p.size * cbytes + weight_bytes + bias_bytes
                         + N_p * nout_p * obytes)

    out_p = pl.pallas_call(
        _mlp_kernel,
        out_shape=jax.ShapeDtypeStruct((N_p, nout_p), out_dtype),
        grid_spec=pltpu.PrefetchScalarGridSpec(
            num_scalar_prefetch=0,
            grid=grid,
            in_specs=[x_spec, w1_spec, b1_spec, w2_spec, b2_spec, w3_spec, b3_spec],
            out_specs=o_spec,
        ),
        compiler_params=pltpu.CompilerParams(
            dimension_semantics=("parallel",),
            vmem_limit_bytes=vmem_limit,
        ),
        cost_estimate=pl.CostEstimate(
            flops=int(flops), transcendentals=0, bytes_accessed=bytes_accessed),
    )(x_p, w1_p, b1_p, w2_p, b2_p, w3_p, b3_p)

    # Slice away row / lane padding.
    return out_p[:N, :nout]


def init_params(key, nfeat, nhid, nout, dtype=jnp.float32):
    """Deterministic init mirroring torch.nn.Linear defaults (uniform +- 1/sqrt(fan_in)).
    Weights are returned already transposed to [in, out]."""
    ks = jax.random.split(key, 6)

    def linear(kw, kb, fan_in, fan_out):
        bound = 1.0 / math.sqrt(fan_in)
        w = jax.random.uniform(kw, (fan_in, fan_out), dtype, -bound, bound)
        b = jax.random.uniform(kb, (1, fan_out), dtype, -bound, bound)
        return w, b

    w1, b1 = linear(ks[0], ks[1], nfeat, nhid)
    w2, b2 = linear(ks[2], ks[3], nhid, nhid)
    w3, b3 = linear(ks[4], ks[5], nhid, nout)
    return (w1, b1, w2, b2, w3, b3)


def mlp_reference(x, params):
    w1, b1, w2, b2, w3, b3 = params
    h = jnp.maximum(x @ w1 + b1, 0.0)
    h = h @ w2 + b2
    return h @ w3 + b3


if __name__ == "__main__":
    # Small shapes consistent with the module: N nodes, nfeat -> nhid -> nhid -> nout.
    # N deliberately not a multiple of the tile to exercise the padding path.
    N, nfeat, nhid, nout = 200, 16, 32, 8
    dropout = 0.5  # unused at inference

    key = jax.random.PRNGKey(0)
    kx, kadj, kp = jax.random.split(key, 3)
    x = jax.random.normal(kx, (N, nfeat), jnp.float32)
    adj = jax.random.normal(kadj, (N, N), jnp.float32)  # unused by forward
    params = init_params(kp, nfeat, nhid, nout)

    ref = mlp_reference(x, params)

    # f32 path: bit-accurate check against the pure-JAX reference.
    out_f32 = jax.block_until_ready(
        mlp_forward(x, adj, params, compute_dtype=jnp.float32))
    assert out_f32.shape == (N, nout), out_f32.shape
    assert jnp.allclose(out_f32, ref, atol=1e-5, rtol=1e-5), "f32 mismatch vs reference"

    # bf16 path (default): MXU-friendly operands, f32 accumulation -> loose tolerance.
    out_bf16 = jax.block_until_ready(
        mlp_forward(x, adj, params, compute_dtype=jnp.bfloat16))
    assert out_bf16.shape == (N, nout), out_bf16.shape
    assert jnp.allclose(out_bf16, ref, atol=1e-1, rtol=5e-2), "bf16 mismatch vs reference"

    print("KERNEL_OK")
</pallas_src>

<mosaic_0001>
module attributes {stable_mosaic.version = 11 : i64} {
  func.func @_mlp_kernel(%arg0: i32, %arg1: memref<200x128xf32, #tpu.memory_space<vmem>>, %arg2: memref<128x128xf32, #tpu.memory_space<vmem>>, %arg3: memref<1x128xf32, #tpu.memory_space<vmem>>, %arg4: memref<128x128xf32, #tpu.memory_space<vmem>>, %arg5: memref<1x128xf32, #tpu.memory_space<vmem>>, %arg6: memref<128x128xf32, #tpu.memory_space<vmem>>, %arg7: memref<1x128xf32, #tpu.memory_space<vmem>>, %arg8: memref<200x128xf32, #tpu.memory_space<vmem>>) attributes {dimension_semantics = [#tpu.dimension_semantics<parallel>], iteration_bounds = array<i64: 1>, scalar_prefetch = 0 : i64, scratch_operands = 0 : i64, tpu.core_type = #tpu.core_type<tc>, window_params = [{transform_indices = @transform_0, window_bounds = array<i64: 200, 128>}, {pipeline_mode = #tpu.pipeline_mode<synchronous>, transform_indices = @transform_1, window_bounds = array<i64: 128, 128>}, {pipeline_mode = #tpu.pipeline_mode<synchronous>, transform_indices = @transform_2, window_bounds = array<i64: 1, 128>}, {pipeline_mode = #tpu.pipeline_mode<synchronous>, transform_indices = @transform_3, window_bounds = array<i64: 128, 128>}, {pipeline_mode = #tpu.pipeline_mode<synchronous>, transform_indices = @transform_4, window_bounds = array<i64: 1, 128>}, {pipeline_mode = #tpu.pipeline_mode<synchronous>, transform_indices = @transform_5, window_bounds = array<i64: 128, 128>}, {pipeline_mode = #tpu.pipeline_mode<synchronous>, transform_indices = @transform_6, window_bounds = array<i64: 1, 128>}, {transform_indices = @transform_7, window_bounds = array<i64: 200, 128>}]} {
    %c0 = arith.constant 0 : index
    %c0_0 = arith.constant 0 : index
    %0 = vector.load %arg1[%c0, %c0_0] : memref<200x128xf32, #tpu.memory_space<vmem>>, vector<200x128xf32>
    %c0_1 = arith.constant 0 : index
    %c0_2 = arith.constant 0 : index
    %1 = vector.load %arg2[%c0_1, %c0_2] : memref<128x128xf32, #tpu.memory_space<vmem>>, vector<128x128xf32>
    %cst = arith.constant dense<0.000000e+00> : vector<200x128xf32>
    %2 = tpu.matmul %0, %1, %cst {dimension_numbers = #tpu.dot_dimension_numbers<[1], [0], [0], [1], [0, 0, 1, 1], [], []>} : vector<200x128xf32>, vector<128x128xf32>, vector<200x128xf32> -> vector<200x128xf32>
    %c0_3 = arith.constant 0 : index
    %c0_4 = arith.constant 0 : index
    %3 = vector.load %arg3[%c0_3, %c0_4] : memref<1x128xf32, #tpu.memory_space<vmem>>, vector<1x128xf32>
    %4 = vector.broadcast %3 : vector<1x128xf32> to vector<200x128xf32>
    %5 = arith.addf %2, %4 : vector<200x128xf32>
    %cst_5 = arith.constant 0.000000e+00 : f32
    %6 = vector.broadcast %cst_5 : f32 to vector<200x128xf32>
    %7 = arith.maximumf %5, %6 : vector<200x128xf32>
    %c0_6 = arith.constant 0 : index
    %c0_7 = arith.constant 0 : index
    %8 = vector.load %arg4[%c0_6, %c0_7] : memref<128x128xf32, #tpu.memory_space<vmem>>, vector<128x128xf32>
    %cst_8 = arith.constant dense<0.000000e+00> : vector<200x128xf32>
    %9 = tpu.matmul %7, %8, %cst_8 {dimension_numbers = #tpu.dot_dimension_numbers<[1], [0], [0], [1], [0, 0, 1, 1], [], []>} : vector<200x128xf32>, vector<128x128xf32>, vector<200x128xf32> -> vector<200x128xf32>
    %c0_9 = arith.constant 0 : index
    %c0_10 = arith.constant 0 : index
    %10 = vector.load %arg5[%c0_9, %c0_10] : memref<1x128xf32, #tpu.memory_space<vmem>>, vector<1x128xf32>
    %11 = vector.broadcast %10 : vector<1x128xf32> to vector<200x128xf32>
    %12 = arith.addf %9, %11 : vector<200x128xf32>
    %c0_11 = arith.constant 0 : index
    %c0_12 = arith.constant 0 : index
    %13 = vector.load %arg6[%c0_11, %c0_12] : memref<128x128xf32, #tpu.memory_space<vmem>>, vector<128x128xf32>
    %cst_13 = arith.constant dense<0.000000e+00> : vector<200x128xf32>
    %14 = tpu.matmul %12, %13, %cst_13 {dimension_numbers = #tpu.dot_dimension_numbers<[1], [0], [0], [1], [0, 0, 1, 1], [], []>} : vector<200x128xf32>, vector<128x128xf32>, vector<200x128xf32> -> vector<200x128xf32>
    %c0_14 = arith.constant 0 : index
    %c0_15 = arith.constant 0 : index
    %15 = vector.load %arg7[%c0_14, %c0_15] : memref<1x128xf32, #tpu.memory_space<vmem>>, vector<1x128xf32>
    %16 = vector.broadcast %15 : vector<1x128xf32> to vector<200x128xf32>
    %17 = arith.addf %14, %16 : vector<200x128xf32>
    %c0_16 = arith.constant 0 : index
    %c0_17 = arith.constant 0 : index
    %18 = vector.load %arg8[%c0_16, %c0_17] : memref<200x128xf32, #tpu.memory_space<vmem>>, vector<200x128xf32>
    tpu.vector_store %arg8[%c0_16, %c0_17], %17 {strides = array<i32>} : memref<200x128xf32, #tpu.memory_space<vmem>>, vector<200x128xf32>,
    return
  }
  func.func @transform_0(%arg0: i32) -> (i32, i32) {
    %c0_i32 = arith.constant 0 : i32
    %c0_i32_0 = arith.constant 0 : i32
    return %arg0, %c0_i32 : i32, i32
  }
  func.func @transform_1(%arg0: i32) -> (i32, i32) {
    %c0_i32 = arith.constant 0 : i32
    %c0_i32_0 = arith.constant 0 : i32
    %c0_i32_1 = arith.constant 0 : i32
    return %c0_i32, %c0_i32_0 : i32, i32
  }
  func.func @transform_2(%arg0: i32) -> (i32, i32) {
    %c0_i32 = arith.constant 0 : i32
    %c0_i32_0 = arith.constant 0 : i32
    %c0_i32_1 = arith.constant 0 : i32
    return %c0_i32, %c0_i32_0 : i32, i32
  }
  func.func @transform_3(%arg0: i32) -> (i32, i32) {
    %c0_i32 = arith.constant 0 : i32
    %c0_i32_0 = arith.constant 0 : i32
    %c0_i32_1 = arith.constant 0 : i32
    return %c0_i32, %c0_i32_0 : i32, i32
  }
  func.func @transform_4(%arg0: i32) -> (i32, i32) {
    %c0_i32 = arith.constant 0 : i32
    %c0_i32_0 = arith.constant 0 : i32
    %c0_i32_1 = arith.constant 0 : i32
    return %c0_i32, %c0_i32_0 : i32, i32
  }
  func.func @transform_5(%arg0: i32) -> (i32, i32) {
    %c0_i32 = arith.constant 0 : i32
    %c0_i32_0 = arith.constant 0 : i32
    %c0_i32_1 = arith.constant 0 : i32
    return %c0_i32, %c0_i32_0 : i32, i32
  }
  func.func @transform_6(%arg0: i32) -> (i32, i32) {
    %c0_i32 = arith.constant 0 : i32
    %c0_i32_0 = arith.constant 0 : i32
    %c0_i32_1 = arith.constant 0 : i32
    return %c0_i32, %c0_i32_0 : i32, i32
  }
  func.func @transform_7(%arg0: i32) -> (i32, i32) {
    %c0_i32 = arith.constant 0 : i32
    %c0_i32_0 = arith.constant 0 : i32
    return %arg0, %c0_i32 : i32, i32
  }
}

</mosaic_0001>

<bundles_post_ra>
// kernel: tpu_custom_call.1
= control target key start
LH: loop header
LB: loop body
LE: loop exit
PB: predicated region body
PF: predicated region fallthrough
CT: control target
= control target key end

     0   :  { %12 = vsyncpa [#allocation3], 0  ;;  %s875_s0 = inlined_call_operand.hbm [shape: f32[200,128], index: 0, kind: input, shape index: {}]   ;;  %s876_s1 = inlined_call_operand.hbm [shape: f32[128,128], index: 1, kind: input, shape index: {}]   ;;  %s877_s2 = inlined_call_operand.vmem [shape: f32[1,128], index: 2, kind: input, shape index: {}]   ;;  %s878_s3 = inlined_call_operand.hbm [shape: f32[128,128], index: 3, kind: input, shape index: {}]   ;;  %s879_s4 = inlined_call_operand.vmem [shape: f32[1,128], index: 4, kind: input, shape index: {}]   ;;  %s880_s5 = inlined_call_operand.hbm [shape: f32[128,128], index: 5, kind: input, shape index: {}]   ;;  %s881_s6 = inlined_call_operand.vmem [shape: f32[1,128], index: 6, kind: input, shape index: {}]   ;;  %s882_s7 = inlined_call_operand.hbm [shape: f32[200,128], index: 7, kind: output, shape index: {}]  }
   0x1   :  { %13 = vsyncpa [#allocation6], 0 }
   0x2   :  { %14 = vsyncpa [#allocation9], 0 }
   0x3   :  { %15 = vsyncpa [#allocation4], 0  ;;  %s33_s26 = sshll.u32 %s876_s1, 4  ;;  %s708_s27 = smov [#allocation5]   ;;  %s34_s26 = int_to_ptr.hbm [resolvable:$true] %s33_s26 }
   0x4   :  { %s35_s28 = sshll.u32 %s708_s27, 4  ;;  %s20_s8 = sshll.u32 %s875_s0, 4  ;;  %s36_s28 = int_to_ptr.vmem [resolvable:$true] %s35_s28  ;;  %s21_s8 = int_to_ptr.hbm [resolvable:$true] %s20_s8 }
   0x5   :  { %s709_s9 = smov 128   ;;  %s710_s10 = smov 8  }
   0x6   :  { %41 = dma.hbm_to_vmem [thread:$0]  %s34_s26, 2048, %s36_s28, [#allocation6], %s709_s9, %s709_s9, %s710_s10  }
   0x7   :  { %s711_s11 = smov [#allocation2]   ;;  %s48_s1 = sshll.u32 %s878_s3, 4  ;;  %s49_s1 = int_to_ptr.hbm [resolvable:$true] %s48_s1 }
   0x8   :  { %s22_s12 = sshll.u32 %s711_s11, 4  ;;  %s63_s16 = sshll.u32 %s880_s5, 4  ;;  %s23_s12 = int_to_ptr.vmem [resolvable:$true] %s22_s12  ;;  %s64_s16 = int_to_ptr.hbm [resolvable:$true] %s63_s16 }
   0x9   :  { %28 = dma.hbm_to_vmem [thread:$0]  %s21_s8, 3200, %s23_s12, [#allocation3], %s709_s9, %s709_s9, %s710_s10  }
   0xa   :  { %s712_s17 = smov [#allocation7]   ;;  %s713_s19 = smov [#allocation8]  }
   0xb   :  { %s50_s18 = sshll.u32 %s712_s17, 4  ;;  %s65_s3 = sshll.u32 %s713_s19, 4  ;;  %s51_s18 = int_to_ptr.vmem [resolvable:$true] %s50_s18  ;;  %s66_s3 = int_to_ptr.vmem [resolvable:$true] %s65_s3 }
   0xc   :  { %56 = dma.hbm_to_vmem [thread:$0]  %s49_s1, 2048, %s51_s18, [#allocation6], %s709_s9, %s709_s9, %s710_s10  }
   0xd   :  { %71 = dma.hbm_to_vmem [thread:$0]  %s64_s16, 2048, %s66_s3, [#allocation9], %s709_s9, %s709_s9, %s710_s10  }
   0xe   :  { %700 = dma.done.wait [#allocation3], 3200  }
   0xf   :  { %701 = vsyncadd [#allocation3], 4294964096 }
  0x10   :  { %702 = dma.done.wait [#allocation6], 4096  }
  0x11   :  { %703 = vsyncadd [#allocation6], 4294963200 }
  0x12   :  { %704 = dma.done.wait [#allocation9], 2048  }
  0x13   :  { %705 = vsyncadd [#allocation9], 4294965248  ;;  %v130_v0 = vld [vmem:[#allocation5 + $0x78] sm:$0xff]  ;;  %v129_v1 = vld [vmem:[#allocation5 + $0x70] sm:$0xff]  ;;  %s507_s26 = sshll.u32 %s882_s7, 4  ;;  %s508_s26 = int_to_ptr.hbm [resolvable:$true] %s507_s26 }
  0x14   :  { %135 = vmatpush.msra.mxu0 %v130_v0  ;;  %522 = vmatpush.msra.mxu3 %v130_v0  ;;  %v128_v2 = vld [vmem:[#allocation5 + $0x68] sm:$0xff]  ;;  %v127_v3 = vld [vmem:[#allocation5 + $0x60] sm:$0xff]  ;;  %v126_v4 = vld [vmem:[#allocation5 + $0x58] sm:$0xff] }
  0x15   :  { %v125_v5 = vld [vmem:[#allocation5 + $0x50] sm:$0xff]  ;;  %v124_v6 = vld [vmem:[#allocation5 + $0x48] sm:$0xff]  ;;  %v123_v7 = vld [vmem:[#allocation5 + $0x40] sm:$0xff] }
  0x16   :  { %136 = vmatpush.msra.mxu0 %v129_v1  ;;  %523 = vmatpush.msra.mxu3 %v129_v1  ;;  %v122_v8 = vld [vmem:[#allocation5 + $0x38] sm:$0xff]  ;;  %v121_v9 = vld [vmem:[#allocation5 + $0x30] sm:$0xff]  ;;  %v120_v10 = vld [vmem:[#allocation5 + $0x28] sm:$0xff] }
  0x17   :  { %v119_v11 = vld [vmem:[#allocation5 + $0x20] sm:$0xff]  ;;  %v118_v12 = vld [vmem:[#allocation5 + $0x18] sm:$0xff]  ;;  %v117_v13 = vld [vmem:[#allocation5 + $0x10] sm:$0xff] }
  0x18   :  { %137 = vmatpush.msra.mxu0 %v128_v2  ;;  %524 = vmatpush.msra.mxu3 %v128_v2  ;;  %v116_v14 = vld [vmem:[#allocation5 + $0x8] sm:$0xff]  ;;  %v115_v15 = vld [vmem:[#allocation5] sm:$0xff]  ;;  %v90_v16 = vld [vmem:[#allocation2] sm:$0xff] }
  0x19   :  { %v91_v17 = vld [vmem:[#allocation2 + $0x8] sm:$0xff]  ;;  %v92_v18 = vld [vmem:[#allocation2 + $0x10] sm:$0xff]  ;;  %v93_v19 = vld [vmem:[#allocation2 + $0x18] sm:$0xff] }
  0x1a   :  { %138 = vmatpush.msra.mxu0 %v127_v3  ;;  %525 = vmatpush.msra.mxu3 %v127_v3  ;;  %v94_v20 = vld [vmem:[#allocation2 + $0x20] sm:$0xff]  ;;  %v95_v21 = vld [vmem:[#allocation2 + $0x28] sm:$0xff]  ;;  %v96_v22 = vld [vmem:[#allocation2 + $0x30] sm:$0xff] }
  0x1b   :  { %v97_v23 = vld [vmem:[#allocation2 + $0x38] sm:$0xff]  ;;  %v98_v25 = vld [vmem:[#allocation2 + $0x40] sm:$0xff]  ;;  %v265_v29 = vld [vmem:[#allocation7 + $0x68] sm:$0xff] }
  0x1c   :  { %139 = vmatpush.msra.mxu0 %v126_v4  ;;  %526 = vmatpush.msra.mxu3 %v126_v4  ;;  %v109_v24 = vld [vmem:[#allocation2 + $0x98] sm:$0xff]  ;;  %v267_v26 = vld [vmem:[#allocation7 + $0x78] sm:$0xff]  ;;  %v99_v30 = vld [vmem:[#allocation2 + $0x48] sm:$0xff] }
  0x1d   :  { %v110_v27 = vld [vmem:[#allocation2 + $0xa0] sm:$0xff]  ;;  %v266_v28 = vld [vmem:[#allocation7 + $0x70] sm:$0xff]  ;;  %272 = vmatpush.msra.mxu1 %v267_v26  ;;  %v264_v31 = vld [vmem:[#allocation7 + $0x60] sm:$0xff] }
  0x1e   :  { %140 = vmatpush.msra.mxu0 %v125_v5  ;;  %527 = vmatpush.msra.mxu3 %v125_v5  ;;  %v263_v32 = vld [vmem:[#allocation7 + $0x58] sm:$0xff]  ;;  %v111_v33 = vld [vmem:[#allocation2 + $0xa8] sm:$0xff]  ;;  %v262_v34 = vld [vmem:[#allocation7 + $0x50] sm:$0xff] }
  0x1f   :  { %273 = vmatpush.msra.mxu1 %v266_v28  ;;  %v261_v35 = vld [vmem:[#allocation7 + $0x48] sm:$0xff]  ;;  %v260_v37 = vld [vmem:[#allocation7 + $0x40] sm:$0xff]  ;;  %v259_v38 = vld [vmem:[#allocation7 + $0x38] sm:$0xff] }
  0x20   :  { %141 = vmatpush.msra.mxu0 %v124_v6  ;;  %528 = vmatpush.msra.mxu3 %v124_v6  ;;  %v100_v36 = vld [vmem:[#allocation2 + $0x50] sm:$0xff]  ;;  %v258_v40 = vld [vmem:[#allocation7 + $0x30] sm:$0xff]  ;;  %v256_v43 = vld [vmem:[#allocation7 + $0x20] sm:$0xff] }
  0x21   :  { %274 = vmatpush.msra.mxu1 %v265_v29  ;;  %v112_v39 = vld [vmem:[#allocation2 + $0xb0] sm:$0xff]  ;;  %v101_v42 = vld [vmem:[#allocation2 + $0x58] sm:$0xff]  ;;  %v255_v44 = vld [vmem:[#allocation7 + $0x18] sm:$0xff] }
  0x22   :  { %142 = vmatpush.msra.mxu0 %v123_v7  ;;  %529 = vmatpush.msra.mxu3 %v123_v7  ;;  %v257_v41 = vld [vmem:[#allocation7 + $0x28] sm:$0xff]  ;;  %v113_v45 = vld [vmem:[#allocation2 + $0xb8] sm:$0xff]  ;;  %v102_v47 = vld [vmem:[#allocation2 + $0x60] sm:$0xff] }
  0x23   :  { %275 = vmatpush.msra.mxu1 %v264_v31  ;;  %v254_v46 = vld [vmem:[#allocation7 + $0x10] sm:$0xff]  ;;  %v253_v48 = vld [vmem:[#allocation7 + $0x8] sm:$0xff]  ;;  %v252_v49 = vld [vmem:[#allocation7] sm:$0xff] }
  0x24   :  { %143 = vmatpush.msra.mxu0 %v122_v8  ;;  %530 = vmatpush.msra.mxu3 %v122_v8  ;;  %v114_v50 = vld [vmem:[#allocation2 + $0xc0] sm:$0xff]  ;;  %v103_v51 = vld [vmem:[#allocation2 + $0x68] sm:$0xff]  ;;  %v104_v52 = vld [vmem:[#allocation2 + $0x70] sm:$0xff] }
  0x25   :  { %276 = vmatpush.msra.mxu1 %v263_v32  ;;  %v105_v53 = vld [vmem:[#allocation2 + $0x78] sm:$0xff]  ;;  %v782_v54 = vld [vmem:[%s877_s2] ss:$0 sm:$0xff]  ;;  %v107_v60 = vld [vmem:[#allocation2 + $0x88] sm:$0xff] }
  0x26   :  { %144 = vmatpush.msra.mxu0 %v121_v9  ;;  %531 = vmatpush.msra.mxu3 %v121_v9  ;;  %v106_v56 = vld [vmem:[#allocation2 + $0x80] sm:$0xff]  ;;  %v108_v0 = vld [vmem:[#allocation2 + $0x90] sm:$0xff] }
  0x27   :  { %277 = vmatpush.msra.mxu1 %v262_v34 }
  0x28   :  { %145 = vmatpush.msra.mxu0 %v120_v10  ;;  %532 = vmatpush.msra.mxu3 %v120_v10 }
  0x29   :  { %278 = vmatpush.msra.mxu1 %v261_v35 }
  0x2a   :  { %146 = vmatpush.msra.mxu0 %v119_v11  ;;  %533 = vmatpush.msra.mxu3 %v119_v11 }
  0x2b   :  { %279 = vmatpush.msra.mxu1 %v260_v37 }
  0x2c   :  { %147 = vmatpush.msra.mxu0 %v118_v12  ;;  %534 = vmatpush.msra.mxu3 %v118_v12 }
  0x2d   :  { %280 = vmatpush.msra.mxu1 %v259_v38 }
  0x2e   :  { %148 = vmatpush.msra.mxu0 %v117_v13  ;;  %535 = vmatpush.msra.mxu3 %v117_v13 }
  0x2f   :  { %281 = vmatpush.msra.mxu1 %v258_v40 }
  0x30   :  { %149 = vmatpush.msra.mxu0 %v116_v14  ;;  %536 = vmatpush.msra.mxu3 %v116_v14 }
  0x31   :  { %282 = vmatpush.msra.mxu1 %v257_v41 }
  0x32   :  { %150 = vmatpush.msra.mxu0 %v115_v15  ;;  %537 = vmatpush.msra.mxu3 %v115_v15 }
  0x33   :  { %151 = vmatmul.f32.vlgmr.msra.gmra.mxu0 %v90_v16  ;;  %208 = vmatmul.f32.vlgmr.msra.gmra.mxu3 %v109_v24  ;;  %v379_v24 = vld [vmem:[#allocation8 + $0x78] sm:$0xff] }
  0x34   :  { %538 = vmatpush.msrb.mxu3 %v267_v26  ;;  %283 = vmatpush.msra.mxu1 %v256_v43 }
  0x35   :  { %384 = vmatpush.msra.mxu2 %v379_v24 }
  0x36   :  { %539 = vmatpush.msrb.mxu3 %v266_v28  ;;  %284 = vmatpush.msra.mxu1 %v255_v44  ;;  %v377_v28 = vld [vmem:[#allocation8 + $0x68] sm:$0xff] }
  0x38   :  { %540 = vmatpush.msrb.mxu3 %v265_v29  ;;  %285 = vmatpush.msra.mxu1 %v254_v46 }
  0x3a   :  { %541 = vmatpush.msrb.mxu3 %v264_v31  ;;  %286 = vmatpush.msra.mxu1 %v253_v48 }
  0x3b   :  { %154 = vmatmul.f32.gmra.mxu0 %v91_v17  ;;  %211 = vmatmul.f32.gmra.mxu3 %v110_v27 }
  0x3c   :  { %542 = vmatpush.msrb.mxu3 %v263_v32  ;;  %287 = vmatpush.msra.mxu1 %v252_v49  ;;  %v376_v32 = vld [vmem:[#allocation8 + $0x60] sm:$0xff] }
  0x3e   :  { %543 = vmatpush.msrb.mxu3 %v262_v34  ;;  %v375_v34 = vld [vmem:[#allocation8 + $0x58] sm:$0xff] }
  0x40   :  { %544 = vmatpush.msrb.mxu3 %v261_v35  ;;  %v374_v35 = vld [vmem:[#allocation8 + $0x50] sm:$0xff] }
  0x42   :  { %545 = vmatpush.msrb.mxu3 %v260_v37 }
  0x43   :  { %157 = vmatmul.f32.gmra.mxu0 %v92_v18  ;;  %214 = vmatmul.f32.gmra.mxu3 %v111_v33 }
  0x44   :  { %546 = vmatpush.msrb.mxu3 %v259_v38  ;;  %v373_v38 = vld [vmem:[#allocation8 + $0x48] sm:$0xff] }
  0x46   :  { %547 = vmatpush.msrb.mxu3 %v258_v40 }
  0x48   :  { %548 = vmatpush.msrb.mxu3 %v257_v41 }
  0x4a   :  { %549 = vmatpush.msrb.mxu3 %v256_v43 }
  0x4b   :  { %160 = vmatmul.f32.gmra.mxu0 %v93_v19  ;;  %217 = vmatmul.f32.gmra.mxu3 %v112_v39 }
  0x4c   :  { %550 = vmatpush.msrb.mxu3 %v255_v44  ;;  %v371_v44 = vld [vmem:[#allocation8 + $0x38] sm:$0xff] }
  0x4e   :  { %551 = vmatpush.msrb.mxu3 %v254_v46 }
  0x50   :  { %552 = vmatpush.msrb.mxu3 %v253_v48  ;;  %v369_v48 = vld [vmem:[#allocation8 + $0x28] sm:$0xff] }
  0x52   :  { %553 = vmatpush.msrb.mxu3 %v252_v49 }
  0x53   :  { %163 = vmatmul.f32.gmra.mxu0 %v94_v20  ;;  %220 = vmatmul.f32.gmra.mxu3 %v113_v45  ;;  %v370_v45 = vld [vmem:[#allocation8 + $0x30] sm:$0xff] }
  0x54   :  { %554 = vmatpush.msra.mxu3 %v379_v24 }
  0x5b   :  { %166 = vmatmul.f32.gmra.mxu0 %v95_v21  ;;  %223 = vmatmul.f32.gmra.mxu3 %v114_v50 }
  0x63   :  { %169 = vmatmul.f32.gmra.mxu0 %v96_v22 }
  0x6b   :  { %172 = vmatmul.f32.gmra.mxu0 %v97_v23 }
  0x73   :  { %175 = vmatmul.f32.gmra.mxu0 %v98_v25  ;;  %v378_v25 = vld [vmem:[#allocation8 + $0x70] sm:$0xff] }
  0x74   :  { %385 = vmatpush.msra.mxu2 %v378_v25  ;;  %555 = vmatpush.msra.mxu3 %v378_v25 }
  0x76   :  { %386 = vmatpush.msra.mxu2 %v377_v28  ;;  %556 = vmatpush.msra.mxu3 %v377_v28 }
  0x78   :  { %387 = vmatpush.msra.mxu2 %v376_v32  ;;  %557 = vmatpush.msra.mxu3 %v376_v32 }
  0x7a   :  { %388 = vmatpush.msra.mxu2 %v375_v34  ;;  %558 = vmatpush.msra.mxu3 %v375_v34 }
  0x7b   :  { %178 = vmatmul.f32.gmra.mxu0 %v99_v30 }
  0x7c   :  { %389 = vmatpush.msra.mxu2 %v374_v35  ;;  %559 = vmatpush.msra.mxu3 %v374_v35 }
  0x7e   :  { %390 = vmatpush.msra.mxu2 %v373_v38  ;;  %560 = vmatpush.msra.mxu3 %v373_v38 }
  0x83   :  { %181 = vmatmul.f32.gmra.mxu0 %v100_v36 }
  0x8b   :  { %184 = vmatmul.f32.gmra.mxu0 %v101_v42  ;;  %v372_v42 = vld [vmem:[#allocation8 + $0x40] sm:$0xff] }
  0x8c   :  { %391 = vmatpush.msra.mxu2 %v372_v42  ;;  %561 = vmatpush.msra.mxu3 %v372_v42 }
  0x8e   :  { %392 = vmatpush.msra.mxu2 %v371_v44  ;;  %562 = vmatpush.msra.mxu3 %v371_v44 }
  0x90   :  { %393 = vmatpush.msra.mxu2 %v370_v45  ;;  %563 = vmatpush.msra.mxu3 %v370_v45 }
  0x92   :  { %394 = vmatpush.msra.mxu2 %v369_v48  ;;  %564 = vmatpush.msra.mxu3 %v369_v48 }
  0x93   :  { %187 = vmatmul.f32.gmra.mxu0 %v102_v47 }
  0x9b   :  { %190 = vmatmul.f32.gmra.mxu0 %v103_v51 }
  0xa3   :  { %193 = vmatmul.f32.gmra.mxu0 %v104_v52  ;;  %v368_v52 = vld [vmem:[#allocation8 + $0x20] sm:$0xff] }
  0xa4   :  { %395 = vmatpush.msra.mxu2 %v368_v52  ;;  %565 = vmatpush.msra.mxu3 %v368_v52 }
  0xab   :  { %196 = vmatmul.f32.gmra.mxu0 %v105_v53 }
  0xb0   :  { %v152_v55 = vpop.f32.mrf.mxu0 }
  0xb1   :  { %v153_v57 = vadd.f32 %v782_v54, %v152_v55  ;;  %v367_v55 = vld [vmem:[#allocation8 + $0x18] sm:$0xff] }
  0xb2   :  { %396 = vmatpush.msra.mxu2 %v367_v55  ;;  %566 = vmatpush.msra.mxu3 %v367_v55 }
  0xb3   :  { %v227_v58 = vmax.f32 %v153_v57, 0.0  ;;  %199 = vmatmul.f32.gmra.mxu0 %v106_v56  ;;  %v366_v56 = vld [vmem:[#allocation8 + $0x10] sm:$0xff] }
  0xb4   :  { %397 = vmatpush.msra.mxu2 %v366_v56  ;;  %567 = vmatpush.msra.mxu3 %v366_v56 }
  0xb5   :  { %288 = vmatmul.f32.vlgmr.msra.gmra.mxu1 %v227_v58 }
  0xb6   :  { %v209_v20 = vpop.f32.mrf.mxu3 }
  0xb7   :  { %v210_v22 = vadd.f32 %v782_v54, %v209_v20 }
  0xb8   :  { %v155_v59 = vpop.f32.mrf.mxu0 }
  0xb9   :  { %v156_v61 = vadd.f32 %v782_v54, %v155_v59  ;;  %v246_v23 = vmax.f32 %v210_v22, 0.0  ;;  %v365_v59 = vld [vmem:[#allocation8 + $0x8] sm:$0xff] }
  0xba   :  { %398 = vmatpush.msra.mxu2 %v365_v59  ;;  %568 = vmatpush.msra.mxu3 %v365_v59 }
  0xbb   :  { %v228_v62 = vmax.f32 %v156_v61, 0.0  ;;  %202 = vmatmul.f32.gmra.mxu0 %v107_v60  ;;  %345 = vmatmul.f32.vlgmr.msrb.gmra.mxu3 %v246_v23 }
  0xbd   :  { %291 = vmatmul.f32.gmra.mxu1 %v228_v62 }
  0xbe   :  { %v212_v29 = vpop.f32.mrf.mxu3 }
  0xbf   :  { %v213_v31 = vadd.f32 %v782_v54, %v212_v29 }
  0xc0   :  { %v158_v63 = vpop.f32.mrf.mxu0 }
  0xc1   :  { %v159_v1 = vadd.f32 %v782_v54, %v158_v63  ;;  %v247_v33 = vmax.f32 %v213_v31, 0.0  ;;  %v364_v63 = vld [vmem:[#allocation8] sm:$0xff] }
  0xc2   :  { %399 = vmatpush.msra.mxu2 %v364_v63  ;;  %569 = vmatpush.msra.mxu3 %v364_v63 }
  0xc3   :  { %v229_v2 = vmax.f32 %v159_v1, 0.0  ;;  %205 = vmatmul.f32.gmra.mxu0 %v108_v0  ;;  %348 = vmatmul.f32.gmra.mxu3 %v247_v33 }
  0xc5   :  { %294 = vmatmul.f32.gmra.mxu1 %v229_v2 }
  0xc6   :  { %v215_v39 = vpop.f32.mrf.mxu3 }
  0xc7   :  { %v216_v41 = vadd.f32 %v782_v54, %v215_v39 }
  0xc8   :  { %v161_v3 = vpop.f32.mrf.mxu0 }
  0xc9   :  { %v162_v4 = vadd.f32 %v782_v54, %v161_v3  ;;  %v248_v43 = vmax.f32 %v216_v41, 0.0 }
  0xcb   :  { %v230_v5 = vmax.f32 %v162_v4, 0.0  ;;  %351 = vmatmul.f32.gmra.mxu3 %v248_v43 }
  0xcd   :  { %297 = vmatmul.f32.gmra.mxu1 %v230_v5 }
  0xce   :  { %v218_v49 = vpop.f32.mrf.mxu3 }
  0xcf   :  { %v219_v51 = vadd.f32 %v782_v54, %v218_v49 }
  0xd0   :  { %v164_v6 = vpop.f32.mrf.mxu0 }
  0xd1   :  { %v165_v7 = vadd.f32 %v782_v54, %v164_v6  ;;  %v249_v53 = vmax.f32 %v219_v51, 0.0 }
  0xd3   :  { %v231_v8 = vmax.f32 %v165_v7, 0.0  ;;  %354 = vmatmul.f32.gmra.mxu3 %v249_v53 }
  0xd5   :  { %300 = vmatmul.f32.gmra.mxu1 %v231_v8 }
  0xd6   :  { %v221_v60 = vpop.f32.mrf.mxu3 }
  0xd7   :  { %v222_v62 = vadd.f32 %v782_v54, %v221_v60 }
  0xd8   :  { %v167_v9 = vpop.f32.mrf.mxu0 }
  0xd9   :  { %v168_v10 = vadd.f32 %v782_v54, %v167_v9  ;;  %v250_v0 = vmax.f32 %v222_v62, 0.0 }
  0xdb   :  { %v232_v11 = vmax.f32 %v168_v10, 0.0  ;;  %357 = vmatmul.f32.gmra.mxu3 %v250_v0 }
  0xdd   :  { %303 = vmatmul.f32.gmra.mxu1 %v232_v11 }
  0xde   :  { %v224_v3 = vpop.f32.mrf.mxu3 }
  0xdf   :  { %v225_v5 = vadd.f32 %v782_v54, %v224_v3 }
  0xe0   :  { %v170_v12 = vpop.f32.mrf.mxu0 }
  0xe1   :  { %v171_v13 = vadd.f32 %v782_v54, %v170_v12  ;;  %v251_v6 = vmax.f32 %v225_v5, 0.0  ;;  %v840_v5 = vld [vmem:[%s881_s6] ss:$0 sm:$0xff]  ;;  %s714_s6 = smov [#allocation10]  }
  0xe2   :  { %s505_s23 = sshll.u32 %s714_s6, 4  ;;  %s506_s23 = int_to_ptr.vmem [resolvable:$true] %s505_s23 }
  0xe3   :  { %v233_v14 = vmax.f32 %v171_v13, 0.0  ;;  %360 = vmatmul.f32.gmra.mxu3 %v251_v6  ;;  %v809_v13 = vld [vmem:[%s879_s4] ss:$0 sm:$0xff] }
  0xe5   :  { %306 = vmatmul.f32.gmra.mxu1 %v233_v14 }
  0xe8   :  { %v173_v15 = vpop.f32.mrf.mxu0 }
  0xe9   :  { %v174_v16 = vadd.f32 %v782_v54, %v173_v15 }
  0xeb   :  { %v234_v17 = vmax.f32 %v174_v16, 0.0 }
  0xed   :  { %309 = vmatmul.f32.gmra.mxu1 %v234_v17 }
  0xf0   :  { %v176_v18 = vpop.f32.mrf.mxu0 }
  0xf1   :  { %v177_v19 = vadd.f32 %v782_v54, %v176_v18 }
  0xf3   :  { %v235_v21 = vmax.f32 %v177_v19, 0.0 }
  0xf5   :  { %312 = vmatmul.f32.gmra.mxu1 %v235_v21 }
  0xf8   :  { %v179_v26 = vpop.f32.mrf.mxu0 }
  0xf9   :  { %v180_v27 = vadd.f32 %v782_v54, %v179_v26 }
  0xfb   :  { %v236_v30 = vmax.f32 %v180_v27, 0.0 }
  0xfd   :  { %315 = vmatmul.f32.gmra.mxu1 %v236_v30 }
 0x100   :  { %v182_v36 = vpop.f32.mrf.mxu0 }
 0x101   :  { %v183_v37 = vadd.f32 %v782_v54, %v182_v36 }
 0x103   :  { %v237_v40 = vmax.f32 %v183_v37, 0.0 }
 0x105   :  { %318 = vmatmul.f32.gmra.mxu1 %v237_v40 }
 0x108   :  { %v185_v46 = vpop.f32.mrf.mxu0 }
 0x109   :  { %v186_v47 = vadd.f32 %v782_v54, %v185_v46 }
 0x10b   :  { %v238_v50 = vmax.f32 %v186_v47, 0.0 }
 0x10d   :  { %321 = vmatmul.f32.gmra.mxu1 %v238_v50 }
 0x110   :  { %v188_v57 = vpop.f32.mrf.mxu0 }
 0x111   :  { %v189_v58 = vadd.f32 %v782_v54, %v188_v57 }
 0x113   :  { %v239_v61 = vmax.f32 %v189_v58, 0.0 }
 0x115   :  { %324 = vmatmul.f32.gmra.mxu1 %v239_v61 }
 0x118   :  { %v191_v1 = vpop.f32.mrf.mxu0 }
 0x119   :  { %v192_v2 = vadd.f32 %v782_v54, %v191_v1 }
 0x11b   :  { %v240_v4 = vmax.f32 %v192_v2, 0.0 }
 0x11d   :  { %327 = vmatmul.f32.gmra.mxu1 %v240_v4 }
 0x120   :  { %v194_v7 = vpop.f32.mrf.mxu0 }
 0x121   :  { %v195_v8 = vadd.f32 %v782_v54, %v194_v7 }
 0x123   :  { %v241_v9 = vmax.f32 %v195_v8, 0.0 }
 0x125   :  { %330 = vmatmul.f32.gmra.mxu1 %v241_v9 }
 0x128   :  { %v197_v10 = vpop.f32.mrf.mxu0 }
 0x129   :  { %v198_v11 = vadd.f32 %v782_v54, %v197_v10 }
 0x12b   :  { %v242_v12 = vmax.f32 %v198_v11, 0.0 }
 0x12d   :  { %333 = vmatmul.f32.gmra.mxu1 %v242_v12 }
 0x130   :  { %v200_v14 = vpop.f32.mrf.mxu0 }
 0x131   :  { %v201_v15 = vadd.f32 %v782_v54, %v200_v14 }
 0x132   :  { %v289_v16 = vpop.f32.mrf.mxu1 }
 0x133   :  { %v243_v17 = vmax.f32 %v201_v15, 0.0  ;;  %v290_v18 = vadd.f32 %v809_v13, %v289_v16 }
 0x135   :  { %336 = vmatmul.f32.gmra.mxu1 %v243_v17  ;;  %400 = vmatmul.f32.vlgmr.msra.gmra.mxu2 %v290_v18 }
 0x138   :  { %v203_v19 = vpop.f32.mrf.mxu0 }
 0x139   :  { %v204_v20 = vadd.f32 %v782_v54, %v203_v19 }
 0x13a   :  { %v292_v21 = vpop.f32.mrf.mxu1 }
 0x13b   :  { %v244_v22 = vmax.f32 %v204_v20, 0.0  ;;  %v293_v23 = vadd.f32 %v809_v13, %v292_v21 }
 0x13d   :  { %339 = vmatmul.f32.gmra.mxu1 %v244_v22  ;;  %403 = vmatmul.f32.gmra.mxu2 %v293_v23 }
 0x13e   :  { %v346_v41 = vpop.f32.mrf.mxu3 }
 0x13f   :  { %v347_v43 = vadd.f32 %v809_v13, %v346_v41 }
 0x140   :  { %v206_v24 = vpop.f32.mrf.mxu0 }
 0x141   :  { %v207_v25 = vadd.f32 %v782_v54, %v206_v24  ;;  %457 = vmatmul.f32.vlgmr.msra.gmra.mxu3 %v347_v43 }
 0x142   :  { %v295_v26 = vpop.f32.mrf.mxu1 }
 0x143   :  { %v245_v27 = vmax.f32 %v207_v25, 0.0  ;;  %v296_v28 = vadd.f32 %v809_v13, %v295_v26 }
 0x145   :  { %342 = vmatmul.f32.gmra.mxu1 %v245_v27  ;;  %406 = vmatmul.f32.gmra.mxu2 %v296_v28 }
 0x146   :  { %v349_v45 = vpop.f32.mrf.mxu3 }
 0x147   :  { %v350_v47 = vadd.f32 %v809_v13, %v349_v45 }
 0x149   :  { %460 = vmatmul.f32.gmra.mxu3 %v350_v47 }
 0x14a   :  { %v298_v29 = vpop.f32.mrf.mxu1 }
 0x14b   :  { %v299_v30 = vadd.f32 %v809_v13, %v298_v29 }
 0x14d   :  { %409 = vmatmul.f32.gmra.mxu2 %v299_v30 }
 0x14e   :  { %v352_v49 = vpop.f32.mrf.mxu3 }
 0x14f   :  { %v353_v51 = vadd.f32 %v809_v13, %v352_v49 }
 0x151   :  { %463 = vmatmul.f32.gmra.mxu3 %v353_v51 }
 0x152   :  { %v301_v31 = vpop.f32.mrf.mxu1 }
 0x153   :  { %v302_v32 = vadd.f32 %v809_v13, %v301_v31 }
 0x155   :  { %412 = vmatmul.f32.gmra.mxu2 %v302_v32 }
 0x156   :  { %v355_v53 = vpop.f32.mrf.mxu3 }
 0x157   :  { %v356_v56 = vadd.f32 %v809_v13, %v355_v53 }
 0x159   :  { %466 = vmatmul.f32.gmra.mxu3 %v356_v56 }
 0x15a   :  { %v304_v33 = vpop.f32.mrf.mxu1 }
 0x15b   :  { %v305_v34 = vadd.f32 %v809_v13, %v304_v33 }
 0x15d   :  { %415 = vmatmul.f32.gmra.mxu2 %v305_v34 }
 0x15e   :  { %v358_v58 = vpop.f32.mrf.mxu3 }
 0x15f   :  { %v359_v60 = vadd.f32 %v809_v13, %v358_v58 }
 0x161   :  { %469 = vmatmul.f32.gmra.mxu3 %v359_v60 }
 0x162   :  { %v307_v35 = vpop.f32.mrf.mxu1 }
 0x163   :  { %v308_v54 = vadd.f32 %v809_v13, %v307_v35 }
 0x165   :  { %418 = vmatmul.f32.gmra.mxu2 %v308_v54 }
 0x166   :  { %v361_v62 = vpop.f32.mrf.mxu3 }
 0x167   :  { %v362_v0 = vadd.f32 %v809_v13, %v361_v62 }
 0x169   :  { %472 = vmatmul.f32.gmra.mxu3 %v362_v0 }
 0x16a   :  { %v310_v36 = vpop.f32.mrf.mxu1 }
 0x16b   :  { %v311_v37 = vadd.f32 %v809_v13, %v310_v36 }
 0x16d   :  { %421 = vmatmul.f32.gmra.mxu2 %v311_v37 }
 0x172   :  { %v313_v38 = vpop.f32.mrf.mxu1 }
 0x173   :  { %v314_v39 = vadd.f32 %v809_v13, %v313_v38 }
 0x175   :  { %424 = vmatmul.f32.gmra.mxu2 %v314_v39 }
 0x17a   :  { %v316_v40 = vpop.f32.mrf.mxu1 }
 0x17b   :  { %v317_v42 = vadd.f32 %v809_v13, %v316_v40 }
 0x17d   :  { %427 = vmatmul.f32.gmra.mxu2 %v317_v42 }
 0x182   :  { %v319_v44 = vpop.f32.mrf.mxu1 }
 0x183   :  { %v320_v46 = vadd.f32 %v809_v13, %v319_v44 }
 0x185   :  { %430 = vmatmul.f32.gmra.mxu2 %v320_v46 }
 0x18a   :  { %v322_v48 = vpop.f32.mrf.mxu1 }
 0x18b   :  { %v323_v50 = vadd.f32 %v809_v13, %v322_v48 }
 0x18d   :  { %433 = vmatmul.f32.gmra.mxu2 %v323_v50 }
 0x192   :  { %v325_v52 = vpop.f32.mrf.mxu1 }
 0x193   :  { %v326_v55 = vadd.f32 %v809_v13, %v325_v52 }
 0x195   :  { %436 = vmatmul.f32.gmra.mxu2 %v326_v55 }
 0x19a   :  { %v328_v57 = vpop.f32.mrf.mxu1 }
 0x19b   :  { %v329_v59 = vadd.f32 %v809_v13, %v328_v57 }
 0x19d   :  { %439 = vmatmul.f32.gmra.mxu2 %v329_v59 }
 0x1a2   :  { %v331_v61 = vpop.f32.mrf.mxu1 }
 0x1a3   :  { %v332_v63 = vadd.f32 %v809_v13, %v331_v61 }
 0x1a5   :  { %442 = vmatmul.f32.gmra.mxu2 %v332_v63 }
 0x1aa   :  { %v334_v1 = vpop.f32.mrf.mxu1 }
 0x1ab   :  { %v335_v2 = vadd.f32 %v809_v13, %v334_v1 }
 0x1ad   :  { %445 = vmatmul.f32.gmra.mxu2 %v335_v2 }
 0x1b2   :  { %v337_v3 = vpop.f32.mrf.mxu1 }
 0x1b3   :  { %v338_v4 = vadd.f32 %v809_v13, %v337_v3 }
 0x1b5   :  { %448 = vmatmul.f32.gmra.mxu2 %v338_v4 }
 0x1b8   :  { %v401_v6 = vpop.f32.mrf.mxu2 }
 0x1b9   :  { %v402_v7 = vadd.f32 %v840_v5, %v401_v6 }
 0x1ba   :  { %v340_v8 = vpop.f32.mrf.mxu1 }
 0x1bb   :  { %476 = vst [vmem:[#allocation10] sm:$0xff] %v402_v7  ;;  %v341_v9 = vadd.f32 %v809_v13, %v340_v8 }
 0x1bd   :  { %451 = vmatmul.f32.gmra.mxu2 %v341_v9 }
 0x1c0   :  { %v404_v10 = vpop.f32.mrf.mxu2 }
 0x1c1   :  { %v405_v11 = vadd.f32 %v840_v5, %v404_v10 }
 0x1c2   :  { %v343_v12 = vpop.f32.mrf.mxu1 }
 0x1c3   :  { %477 = vst [vmem:[#allocation10 + $0x8] sm:$0xff] %v405_v11  ;;  %v344_v14 = vadd.f32 %v809_v13, %v343_v12 }
 0x1c4   :  { %v458_v29 = vpop.f32.mrf.mxu3 }
 0x1c5   :  { %454 = vmatmul.f32.gmra.mxu2 %v344_v14  ;;  %v459_v31 = vadd.f32 %v840_v5, %v458_v29 }
 0x1c7   :  { %495 = vst [vmem:[#allocation10 + $0x98] sm:$0xff] %v459_v31 }
 0x1c8   :  { %v407_v15 = vpop.f32.mrf.mxu2 }
 0x1c9   :  { %v408_v16 = vadd.f32 %v840_v5, %v407_v15 }
 0x1cb   :  { %478 = vst [vmem:[#allocation10 + $0x10] sm:$0xff] %v408_v16 }
 0x1cc   :  { %v461_v33 = vpop.f32.mrf.mxu3 }
 0x1cd   :  { %v462_v35 = vadd.f32 %v840_v5, %v461_v33 }
 0x1cf   :  { %496 = vst [vmem:[#allocation10 + $0xa0] sm:$0xff] %v462_v35 }
 0x1d0   :  { %v410_v17 = vpop.f32.mrf.mxu2 }
 0x1d1   :  { %v411_v18 = vadd.f32 %v840_v5, %v410_v17 }
 0x1d3   :  { %479 = vst [vmem:[#allocation10 + $0x18] sm:$0xff] %v411_v18 }
 0x1d4   :  { %v464_v36 = vpop.f32.mrf.mxu3 }
 0x1d5   :  { %v465_v38 = vadd.f32 %v840_v5, %v464_v36 }
 0x1d7   :  { %497 = vst [vmem:[#allocation10 + $0xa8] sm:$0xff] %v465_v38 }
 0x1d8   :  { %v413_v19 = vpop.f32.mrf.mxu2 }
 0x1d9   :  { %v414_v20 = vadd.f32 %v840_v5, %v413_v19 }
 0x1db   :  { %480 = vst [vmem:[#allocation10 + $0x20] sm:$0xff] %v414_v20 }
 0x1dc   :  { %v467_v40 = vpop.f32.mrf.mxu3 }
 0x1dd   :  { %v468_v42 = vadd.f32 %v840_v5, %v467_v40 }
 0x1df   :  { %498 = vst [vmem:[#allocation10 + $0xb0] sm:$0xff] %v468_v42 }
 0x1e0   :  { %v416_v21 = vpop.f32.mrf.mxu2 }
 0x1e1   :  { %v417_v22 = vadd.f32 %v840_v5, %v416_v21 }
 0x1e3   :  { %481 = vst [vmem:[#allocation10 + $0x28] sm:$0xff] %v417_v22 }
 0x1e4   :  { %v470_v44 = vpop.f32.mrf.mxu3 }
 0x1e5   :  { %v471_v46 = vadd.f32 %v840_v5, %v470_v44 }
 0x1e7   :  { %499 = vst [vmem:[#allocation10 + $0xb8] sm:$0xff] %v471_v46 }
 0x1e8   :  { %v419_v23 = vpop.f32.mrf.mxu2 }
 0x1e9   :  { %v420_v13 = vadd.f32 %v840_v5, %v419_v23 }
 0x1eb   :  { %482 = vst [vmem:[#allocation10 + $0x30] sm:$0xff] %v420_v13 }
 0x1ec   :  { %v473_v48 = vpop.f32.mrf.mxu3 }
 0x1ed   :  { %v474_v50 = vadd.f32 %v840_v5, %v473_v48 }
 0x1ef   :  { %500 = vst [vmem:[#allocation10 + $0xc0] sm:$0xff] %v474_v50 }
 0x1f0   :  { %v422_v24 = vpop.f32.mrf.mxu2 }
 0x1f1   :  { %v423_v25 = vadd.f32 %v840_v5, %v422_v24 }
 0x1f3   :  { %483 = vst [vmem:[#allocation10 + $0x38] sm:$0xff] %v423_v25 }
 0x1f8   :  { %v425_v26 = vpop.f32.mrf.mxu2 }
 0x1f9   :  { %v426_v27 = vadd.f32 %v840_v5, %v425_v26 }
 0x1fb   :  { %484 = vst [vmem:[#allocation10 + $0x40] sm:$0xff] %v426_v27 }
 0x200   :  { %v428_v28 = vpop.f32.mrf.mxu2 }
 0x201   :  { %v429_v30 = vadd.f32 %v840_v5, %v428_v28 }
 0x203   :  { %485 = vst [vmem:[#allocation10 + $0x48] sm:$0xff] %v429_v30 }
 0x208   :  { %v431_v32 = vpop.f32.mrf.mxu2 }
 0x209   :  { %v432_v34 = vadd.f32 %v840_v5, %v431_v32 }
 0x20b   :  { %486 = vst [vmem:[#allocation10 + $0x50] sm:$0xff] %v432_v34 }
 0x210   :  { %v434_v54 = vpop.f32.mrf.mxu2 }
 0x211   :  { %v435_v37 = vadd.f32 %v840_v5, %v434_v54 }
 0x213   :  { %487 = vst [vmem:[#allocation10 + $0x58] sm:$0xff] %v435_v37 }
 0x218   :  { %v437_v39 = vpop.f32.mrf.mxu2 }
 0x219   :  { %v438_v41 = vadd.f32 %v840_v5, %v437_v39 }
 0x21b   :  { %488 = vst [vmem:[#allocation10 + $0x60] sm:$0xff] %v438_v41 }
 0x220   :  { %v440_v43 = vpop.f32.mrf.mxu2 }
 0x221   :  { %v441_v45 = vadd.f32 %v840_v5, %v440_v43 }
 0x223   :  { %489 = vst [vmem:[#allocation10 + $0x68] sm:$0xff] %v441_v45 }
 0x228   :  { %v443_v47 = vpop.f32.mrf.mxu2 }
 0x229   :  { %v444_v49 = vadd.f32 %v840_v5, %v443_v47 }
 0x22b   :  { %490 = vst [vmem:[#allocation10 + $0x70] sm:$0xff] %v444_v49 }
 0x230   :  { %v446_v51 = vpop.f32.mrf.mxu2 }
 0x231   :  { %v447_v52 = vadd.f32 %v840_v5, %v446_v51 }
 0x233   :  { %491 = vst [vmem:[#allocation10 + $0x78] sm:$0xff] %v447_v52 }
 0x238   :  { %v449_v53 = vpop.f32.mrf.mxu2 }
 0x239   :  { %v450_v55 = vadd.f32 %v840_v5, %v449_v53 }
 0x23b   :  { %492 = vst [vmem:[#allocation10 + $0x80] sm:$0xff] %v450_v55 }
 0x240   :  { %v452_v56 = vpop.f32.mrf.mxu2 }
 0x241   :  { %v453_v57 = vadd.f32 %v840_v5, %v452_v56 }
 0x243   :  { %493 = vst [vmem:[#allocation10 + $0x88] sm:$0xff] %v453_v57 }
 0x248   :  { %v455_v58 = vpop.f32.mrf.mxu2 }
 0x249   :  { %v456_v59 = vadd.f32 %v840_v5, %v455_v58 }
 0x24b   :  { %494 = vst [vmem:[#allocation10 + $0x90] sm:$0xff] %v456_v59 }
 0x24c   :  { %513 = dma.vmem_to_hbm [thread:$0]  %s506_s23, 3200, %s508_s26, [#allocation4], %s709_s9, %s709_s9, %s710_s10  }
 0x24d   :  { %706 = dma.done.wait [#allocation4], 3200  }
 0x24e   :  { %707 = vsyncadd [#allocation4], 4294964096 }
 0x24f   :  { %518 = vsyncpa [#allocation3], 1 }
 0x250   :  { %519 = vsyncpa [#allocation6], 1 }
 0x251   :  { %520 = vsyncpa [#allocation9], 1 }
 0x252   :  { %521 = vsyncpa [#allocation4], 1 }

</bundles_post_ra>
